<compile_context>
chip_gen: v5e
topology: v5e:2x2
jax: 0.10.0
libtpu: 0.0.40
codegen_flags: <defaults>
</compile_context>

<pallas_src>
import math
import numpy as np
import jax
import jax.numpy as jnp
from jax.experimental import pallas as pl
from jax.experimental.pallas import tpu as pltpu


def build_pe_table(max_len, dim_emb):
    """Replicates PropPositionalEncoding.__init__ sinusoidal table (host-side)."""
    pe = np.zeros((max_len, dim_emb), dtype=np.float32)
    position = np.arange(0, max_len, dtype=np.float32)[:, None]
    div_term = np.exp(np.arange(0, dim_emb, 2, dtype=np.float32)
                      * (-math.log(10000.0) / dim_emb))
    pe[:, 0::2] = np.sin(position * div_term)
    pe[:, 1::2] = np.cos(position * div_term)
    return pe


def _prop_pe_kernel(se_ref, x_ref, pe_ref, wt_ref, b_ref, o_ref):
    # se_ref : (TM, 2) int32   -- (s, e) boundaries for this row tile
    # x_ref  : (TM, Din)
    # pe_ref : (max_len, Demb)           (resident)
    # wt_ref : (Din + 2*Demb, Din)       (= fc.weight.T, resident)
    # b_ref  : (1, Din)
    # o_ref  : (TM, Din)
    x = x_ref[...]
    se = se_ref[...]
    pe = pe_ref[...]

    tm, d_in = x.shape
    max_len, d_emb = pe.shape

    # Gather pe[s] and pe[e-1] as one-hot @ pe (MXU, no dynamic gather).
    lanes = jax.lax.broadcasted_iota(jnp.int32, (tm, max_len), 1)
    onehot_s = (se[:, 0:1] == lanes).astype(pe.dtype)
    onehot_e = ((se[:, 1:2] - 1) == lanes).astype(pe.dtype)
    pos_s = jnp.dot(onehot_s, pe, preferred_element_type=jnp.float32)
    pos_e = jnp.dot(onehot_e, pe, preferred_element_type=jnp.float32)

    # fc([x, pos_s, pos_e]) = x@Wx + pos_s@Ws + pos_e@We + b  (no concat).
    w_x = wt_ref[0:d_in, :]
    w_s = wt_ref[d_in:d_in + d_emb, :]
    w_e = wt_ref[d_in + d_emb:d_in + 2 * d_emb, :]

    acc = jnp.dot(x, w_x, preferred_element_type=jnp.float32)
    acc = acc + jnp.dot(pos_s.astype(w_s.dtype), w_s,
                        preferred_element_type=jnp.float32)
    acc = acc + jnp.dot(pos_e.astype(w_e.dtype), w_e,
                        preferred_element_type=jnp.float32)
    acc = acc + b_ref[...].astype(jnp.float32)

    o_ref[...] = acc.astype(o_ref.dtype)


def _pick_row_tile(m):
    for tm in (512, 256, 128):
        if m % tm == 0:
            return tm
    return m  # single full-extent tile: no (8,128) divisibility constraint


def prop_positional_encoding(x, prop_s_e, pe, weight, bias):
    """Pallas implementation of PropPositionalEncoding.forward.

    Args:
      x        : (B, N, Din) or (M, Din) float array.
      prop_s_e : (M, 2) int proposal (start, end) indices, M = B*N.
      pe       : (max_len, Demb) sinusoidal table (build_pe_table).
      weight   : (Din, Din + 2*Demb) fc weight (PyTorch layout).
      bias     : (Din,) fc bias.
    Returns:
      Array with the same leading shape as x and trailing dim Din.
    """
    orig_3d = x.ndim == 3
    if orig_3d:
        B, N, d_in = x.shape
        x2d = x.reshape(B * N, d_in)
    else:
        x2d = x
        d_in = x.shape[-1]
    m = x2d.shape[0]
    max_len, d_emb = pe.shape

    wt = jnp.asarray(weight).T                     # (Din + 2*Demb, Din)
    b2d = jnp.asarray(bias).reshape(1, d_in)
    se = jnp.asarray(prop_s_e, dtype=jnp.int32)
    pe = jnp.asarray(pe)

    tm = _pick_row_tile(m)
    grid = (m // tm,)

    out2d = pl.pallas_call(
        _prop_pe_kernel,
        out_shape=jax.ShapeDtypeStruct((m, d_in), x.dtype),
        grid=grid,
        in_specs=[
            pl.BlockSpec((tm, 2), lambda i: (i, 0)),
            pl.BlockSpec((tm, d_in), lambda i: (i, 0)),
            pl.BlockSpec((max_len, d_emb), lambda i: (0, 0)),
            pl.BlockSpec((d_in + 2 * d_emb, d_in), lambda i: (0, 0)),
            pl.BlockSpec((1, d_in), lambda i: (0, 0)),
        ],
        out_specs=pl.BlockSpec((tm, d_in), lambda i: (i, 0)),
        compiler_params=pltpu.CompilerParams(
            dimension_semantics=("parallel",)),
    )(se, x2d, pe, wt, b2d)

    if orig_3d:
        return out2d.reshape(B, N, d_in)
    return out2d


def _reference(x, prop_s_e, pe, weight, bias):
    """Pure-JAX reference of the PyTorch forward for correctness checking."""
    orig_3d = x.ndim == 3
    if orig_3d:
        B, N, d = x.shape
        x2 = x.reshape(-1, d)
    else:
        x2 = x
    s = prop_s_e[:, 0]
    e = prop_s_e[:, 1]
    pos_s = pe[s]
    pos_e = pe[e - 1]
    feat = jnp.concatenate([x2, pos_s, pos_e], axis=-1)
    out = feat @ weight.T + bias
    if orig_3d:
        out = out.reshape(B, N, d)
    return out


if __name__ == "__main__":
    # Small deterministic example consistent with the module:
    # B=2 batches, N=8 proposals each, dim_in=32, dim_emb=16, max_len=16.
    B, N = 2, 8
    dim_in, dim_emb, max_len = 32, 16, 16
    M = B * N

    key = jax.random.PRNGKey(0)
    kx, kw, kb, ks, ke = jax.random.split(key, 5)
    x = jax.random.normal(kx, (B, N, dim_in), dtype=jnp.float32)
    weight = jax.random.normal(kw, (dim_in, dim_in + 2 * dim_emb),
                               dtype=jnp.float32) * 0.05
    bias = jax.random.normal(kb, (dim_in,), dtype=jnp.float32) * 0.1
    s_idx = jax.random.randint(ks, (M,), 0, max_len)      # s in [0, max_len)
    e_idx = jax.random.randint(ke, (M,), 1, max_len + 1)  # e in [1, max_len]
    prop_s_e = jnp.stack([s_idx, e_idx], axis=1).astype(jnp.int32)

    pe = jnp.asarray(build_pe_table(max_len, dim_emb))

    out = prop_positional_encoding(x, prop_s_e, pe, weight, bias)
    out = jax.block_until_ready(out)

    expected = _reference(x, prop_s_e, pe, weight, bias)
    if not np.allclose(np.asarray(out), np.asarray(expected),
                       atol=1e-4, rtol=1e-4):
        raise AssertionError("Pallas kernel output mismatch vs reference")
    assert out.shape == (B, N, dim_in)

    print("KERNEL_OK")
</pallas_src>

<mosaic_0001>
module attributes {stable_mosaic.version = 11 : i64} {
  func.func @_prop_pe_kernel(%arg0: i32, %arg1: memref<16x2xi32, #tpu.memory_space<vmem>>, %arg2: memref<16x32xf32, #tpu.memory_space<vmem>>, %arg3: memref<16x16xf32, #tpu.memory_space<vmem>>, %arg4: memref<64x32xf32, #tpu.memory_space<vmem>>, %arg5: memref<1x32xf32, #tpu.memory_space<vmem>>, %arg6: memref<16x32xf32, #tpu.memory_space<vmem>>) attributes {dimension_semantics = [#tpu.dimension_semantics<parallel>], iteration_bounds = array<i64: 1>, scalar_prefetch = 0 : i64, scratch_operands = 0 : i64, tpu.core_type = #tpu.core_type<tc>, window_params = [{transform_indices = @transform_0, window_bounds = array<i64: 16, 2>}, {transform_indices = @transform_1, window_bounds = array<i64: 16, 32>}, {pipeline_mode = #tpu.pipeline_mode<synchronous>, transform_indices = @transform_2, window_bounds = array<i64: 16, 16>}, {pipeline_mode = #tpu.pipeline_mode<synchronous>, transform_indices = @transform_3, window_bounds = array<i64: 64, 32>}, {pipeline_mode = #tpu.pipeline_mode<synchronous>, transform_indices = @transform_4, window_bounds = array<i64: 1, 32>}, {transform_indices = @transform_5, window_bounds = array<i64: 16, 32>}]} {
    %c0 = arith.constant 0 : index
    %c0_0 = arith.constant 0 : index
    %0 = vector.load %arg2[%c0, %c0_0] : memref<16x32xf32, #tpu.memory_space<vmem>>, vector<16x32xf32>
    %c0_1 = arith.constant 0 : index
    %c0_2 = arith.constant 0 : index
    %1 = vector.load %arg1[%c0_1, %c0_2] : memref<16x2xi32, #tpu.memory_space<vmem>>, vector<16x2xi32>
    %c0_3 = arith.constant 0 : index
    %c0_4 = arith.constant 0 : index
    %2 = vector.load %arg3[%c0_3, %c0_4] : memref<16x16xf32, #tpu.memory_space<vmem>>, vector<16x16xf32>
    %3 = tpu.iota {dimensions = array<i32: 1>} : vector<16x16xi32>
    %4 = vector.extract_strided_slice %1 {offsets = [0, 0], sizes = [16, 1], strides = [1, 1]} : vector<16x2xi32> to vector<16x1xi32>
    %5 = vector.broadcast %4 : vector<16x1xi32> to vector<16x16xi32>
    %6 = arith.cmpi eq, %5, %3 : vector<16x16xi32>
    %7 = arith.extui %6 : vector<16x16xi1> to vector<16x16xi32>
    %8 = arith.sitofp %7 : vector<16x16xi32> to vector<16x16xf32>
    %9 = vector.extract_strided_slice %1 {offsets = [0, 1], sizes = [16, 1], strides = [1, 1]} : vector<16x2xi32> to vector<16x1xi32>
    %c1_i32 = arith.constant 1 : i32
    %10 = vector.broadcast %c1_i32 : i32 to vector<16x1xi32>
    %11 = arith.subi %9, %10 : vector<16x1xi32>
    %12 = vector.broadcast %11 : vector<16x1xi32> to vector<16x16xi32>
    %13 = arith.cmpi eq, %12, %3 : vector<16x16xi32>
    %14 = arith.extui %13 : vector<16x16xi1> to vector<16x16xi32>
    %15 = arith.sitofp %14 : vector<16x16xi32> to vector<16x16xf32>
    %cst = arith.constant dense<0.000000e+00> : vector<16x16xf32>
    %16 = tpu.matmul %8, %2, %cst {dimension_numbers = #tpu.dot_dimension_numbers<[1], [0], [0], [1], [0, 0, 1, 1], [], []>} : vector<16x16xf32>, vector<16x16xf32>, vector<16x16xf32> -> vector<16x16xf32>
    %cst_5 = arith.constant dense<0.000000e+00> : vector<16x16xf32>
    %17 = tpu.matmul %15, %2, %cst_5 {dimension_numbers = #tpu.dot_dimension_numbers<[1], [0], [0], [1], [0, 0, 1, 1], [], []>} : vector<16x16xf32>, vector<16x16xf32>, vector<16x16xf32> -> vector<16x16xf32>
    %c0_6 = arith.constant 0 : index
    %c0_7 = arith.constant 0 : index
    %18 = vector.load %arg4[%c0_6, %c0_7] : memref<64x32xf32, #tpu.memory_space<vmem>>, vector<32x32xf32>
    %c32 = arith.constant 32 : index
    %c0_8 = arith.constant 0 : index
    %19 = vector.load %arg4[%c32, %c0_8] : memref<64x32xf32, #tpu.memory_space<vmem>>, vector<16x32xf32>
    %c48 = arith.constant 48 : index
    %c0_9 = arith.constant 0 : index
    %20 = vector.load %arg4[%c48, %c0_9] : memref<64x32xf32, #tpu.memory_space<vmem>>, vector<16x32xf32>
    %cst_10 = arith.constant dense<0.000000e+00> : vector<16x32xf32>
    %21 = tpu.matmul %0, %18, %cst_10 {dimension_numbers = #tpu.dot_dimension_numbers<[1], [0], [0], [1], [0, 0, 1, 1], [], []>} : vector<16x32xf32>, vector<32x32xf32>, vector<16x32xf32> -> vector<16x32xf32>
    %cst_11 = arith.constant dense<0.000000e+00> : vector<16x32xf32>
    %22 = tpu.matmul %16, %19, %cst_11 {dimension_numbers = #tpu.dot_dimension_numbers<[1], [0], [0], [1], [0, 0, 1, 1], [], []>} : vector<16x16xf32>, vector<16x32xf32>, vector<16x32xf32> -> vector<16x32xf32>
    %23 = arith.addf %21, %22 : vector<16x32xf32>
    %cst_12 = arith.constant dense<0.000000e+00> : vector<16x32xf32>
    %24 = tpu.matmul %17, %20, %cst_12 {dimension_numbers = #tpu.dot_dimension_numbers<[1], [0], [0], [1], [0, 0, 1, 1], [], []>} : vector<16x16xf32>, vector<16x32xf32>, vector<16x32xf32> -> vector<16x32xf32>
    %25 = arith.addf %23, %24 : vector<16x32xf32>
    %c0_13 = arith.constant 0 : index
    %c0_14 = arith.constant 0 : index
    %26 = vector.load %arg5[%c0_13, %c0_14] : memref<1x32xf32, #tpu.memory_space<vmem>>, vector<1x32xf32>
    %27 = vector.broadcast %26 : vector<1x32xf32> to vector<16x32xf32>
    %28 = arith.addf %25, %27 : vector<16x32xf32>
    %c0_15 = arith.constant 0 : index
    %c0_16 = arith.constant 0 : index
    %29 = vector.load %arg6[%c0_15, %c0_16] : memref<16x32xf32, #tpu.memory_space<vmem>>, vector<16x32xf32>
    tpu.vector_store %arg6[%c0_15, %c0_16], %28 {strides = array<i32>} : memref<16x32xf32, #tpu.memory_space<vmem>>, vector<16x32xf32>,
    return
  }
  func.func @transform_0(%arg0: i32) -> (i32, i32) {
    %c0_i32 = arith.constant 0 : i32
    %c0_i32_0 = arith.constant 0 : i32
    return %arg0, %c0_i32 : i32, i32
  }
  func.func @transform_1(%arg0: i32) -> (i32, i32) {
    %c0_i32 = arith.constant 0 : i32
    %c0_i32_0 = arith.constant 0 : i32
    return %arg0, %c0_i32 : i32, i32
  }
  func.func @transform_2(%arg0: i32) -> (i32, i32) {
    %c0_i32 = arith.constant 0 : i32
    %c0_i32_0 = arith.constant 0 : i32
    %c0_i32_1 = arith.constant 0 : i32
    return %c0_i32, %c0_i32_0 : i32, i32
  }
  func.func @transform_3(%arg0: i32) -> (i32, i32) {
    %c0_i32 = arith.constant 0 : i32
    %c0_i32_0 = arith.constant 0 : i32
    %c0_i32_1 = arith.constant 0 : i32
    return %c0_i32, %c0_i32_0 : i32, i32
  }
  func.func @transform_4(%arg0: i32) -> (i32, i32) {
    %c0_i32 = arith.constant 0 : i32
    %c0_i32_0 = arith.constant 0 : i32
    %c0_i32_1 = arith.constant 0 : i32
    return %c0_i32, %c0_i32_0 : i32, i32
  }
  func.func @transform_5(%arg0: i32) -> (i32, i32) {
    %c0_i32 = arith.constant 0 : i32
    %c0_i32_0 = arith.constant 0 : i32
    return %arg0, %c0_i32 : i32, i32
  }
}

</mosaic_0001>

<bundles_post_ra>
// kernel: tpu_custom_call.1
= control target key start
LH: loop header
LB: loop body
LE: loop exit
PB: predicated region body
PF: predicated region fallthrough
CT: control target
= control target key end

     0   :  { %v292_v2 = vmov 0   ;;  %v293_v3 = vmov 1   ;;  %s388_s0 = inlined_call_operand.vmem [shape: s32[16,2], index: 0, kind: input, shape index: {}]   ;;  %s389_s1 = inlined_call_operand.vmem [shape: f32[16,32], index: 1, kind: input, shape index: {}]   ;;  %s390_s2 = inlined_call_operand.vmem [shape: f32[16,16], index: 2, kind: input, shape index: {}]   ;;  %s391_s3 = inlined_call_operand.vmem [shape: f32[64,32], index: 3, kind: input, shape index: {}]   ;;  %s392_s4 = inlined_call_operand.vmem [shape: f32[1,32], index: 4, kind: input, shape index: {}]   ;;  %s393_s5 = inlined_call_operand.hbm [shape: f32[16,32], index: 5, kind: output, shape index: {}]  }
   0x1   :  { %v23_v0 = vld [vmem:[%s388_s0] sm:$0xff]  ;;  %v26_v1 = vld [vmem:[%s390_s2 + $0x8] sm:$0xff]  ;;  %262 = vset.pattern.permute.xlu0 %v292_v2  ;;  %263 = vset.pattern.permute.xlu1 %v293_v3 }
   0x2   :  { %v240_v4 = vadd.s32 4294967295, %v23_v0 }
   0x3   :  { %10 = vsyncpa [#allocation3], 0  ;;  %30 = vperm.xlu0 %262, %v23_v0   ;;  %76 = vmatpush.msra.mxu0 %v26_v1  ;;  %v24_v5 = vld [vmem:[%s388_s0 + $0x8] sm:$0xff]  ;;  %v25_v7 = vld [vmem:[%s390_s2] sm:$0xff]  ;;  %v27_v8 = vlaneseq  ;;  %vm55_vm0 = vcmask 130048   ;;  %v294_v15 = vmov 0.0  }
   0x4   :  { %44 = vperm.xlu1 %263, %v240_v4   ;;  %254 = vmatpush.msra.mxu1 %v26_v1  ;;  %v241_v6 = vadd.s32 4294967295, %v24_v5  ;;  %v117_v9 = vld [vmem:[%s391_s3 + $0x18] sm:$0xff]  ;;  %v116_v10 = vld [vmem:[%s391_s3 + $0x10] sm:$0xff]  ;;  %v119_v11 = vld [vmem:[%s391_s3 + $0x28] sm:$0xff]  ;;  %vm151_vm5 = vcmask 261120   ;;  %s226_s23 = sshll.u32 %s393_s5, 4  ;;  %s227_s23 = int_to_ptr.hbm [resolvable:$true] %s226_s23 }
   0x5   :  { %77 = vmatpush.msra.mxu0 %v25_v7  ;;  %170 = vmatpush.msra.mxu3 %v117_v9  ;;  %v28_v12 = vand.u32 127, %v27_v8  ;;  %v115_v13 = vld [vmem:[%s391_s3 + $0x8] sm:$0xff]  ;;  %v118_v23 = vld [vmem:[%s391_s3 + $0x20] sm:$0xff]  ;;  %v121_v27 = vld [vmem:[%s391_s3 + $0x38] sm:$0xff]  ;;  %s297_s24 = smov 8  }
   0x6   :  { %255 = vmatpush.msra.mxu1 %v25_v7  ;;  %142 = vmatpush.msra.mxu2 %v119_v11  ;;  %v114_v24 = vld [vmem:[%s391_s3] sm:$0xff]  ;;  %v22_v26 = vld [vmem:[%s389_s1 + $0x8] sm:$0xff]  ;;  %v120_v28 = vld [vmem:[%s391_s3 + $0x30] sm:$0xff]  ;;  %s295_s3 = smov [#allocation2]  }
   0x7   :  { %171 = vmatpush.msra.mxu3 %v116_v10  ;;  %v21_v25 = vld [vmem:[%s389_s1] sm:$0xff]  ;;  %201 = vmatpush.msrb.mxu0 %v121_v27  ;;  %s224_s20 = sshll.u32 %s295_s3, 4  ;;  %s225_s20 = int_to_ptr.vmem [resolvable:$true] %s224_s20 }
   0x8   :  { %105 = vmatpush.msrb.mxu1 %v26_v1  ;;  %143 = vmatpush.msra.mxu2 %v118_v23  ;;  %v265_v36 = vld [vmem:[%s392_s4] ss:$0 sm:$0xff]  ;;  %s296_s4 = smov 128  }
   0x9   :  { %172 = vmatpush.msra.mxu3 %v115_v13  ;;  %202 = vmatpush.msrb.mxu0 %v120_v28 }
   0xa   :  { %106 = vmatpush.msrb.mxu1 %v25_v7 }
   0xb   :  { %33 = vperm.xlu0 %262, %v24_v5   ;;  %173 = vmatpush.msra.mxu3 %v114_v24 }
   0xc   :  { %47 = vperm.xlu1 %263, %v241_v6   ;;  %250 = vmatmul.msk.f32.vlgmr.msra.gmra.mxu3 %vm151_vm5, %v21_v25 }
  0x13   :  { %264 = vset.pattern.permute.xlu0 %v293_v3 }
  0x14   :  { %251 = vmatmul.msk.f32.gmra.mxu3 %vm151_vm5, %v22_v26 }
  0x75   :  { %v31_v14 = vpop.permute.xlu0 %30 }
  0x76   :  { %vm35_vm1 = vcmp.eq.s32.totalorder %v31_v14, %v28_v12  ;;  %v45_v19 = vpop.permute.xlu1 %44 }
  0x77   :  { %v238_v16 = vsel %vm35_vm1, 1.0, %v294_v15  ;;  %vm49_vm3 = vcmp.eq.s32.totalorder %v45_v19, %v28_v12 }
  0x78   :  { %244 = vmatmul.msk.f32.vlgmr.msra.gmra.mxu0 %vm55_vm0, %v238_v16  ;;  %v242_v20 = vsel %vm49_vm3, 1.0, %v294_v15 }
  0x7d   :  { %v34_v17 = vpop.permute.xlu0 %33 }
  0x7e   :  { %vm36_vm2 = vcmp.eq.s32.totalorder %v34_v17, %v28_v12  ;;  %v48_v21 = vpop.permute.xlu1 %47 }
  0x7f   :  { %v239_v18 = vsel %vm36_vm2, 1.0, %v294_v15  ;;  %vm50_vm4 = vcmp.eq.s32.totalorder %v48_v21, %v28_v12 }
  0x80   :  { %245 = vmatmul.msk.f32.vlgmr.msra.gmra.mxu1 %vm55_vm0, %v239_v18  ;;  %v243_v22 = vsel %vm50_vm4, 1.0, %v294_v15 }
  0x88   :  { %246 = vmatmul.msk.f32.vlgmr.msrb.gmra.mxu1 %vm55_vm0, %v242_v20 }
  0x8f   :  { %v175_v34 = vpop.f32.mrf.mxu3 }
  0x90   :  { %247 = vmatmul.msk.f32.gmra.mxu1 %vm55_vm0, %v243_v22 }
  0x97   :  { %v178_v41 = vpop.f32.mrf.mxu3 }
  0xf5   :  { %v79_v29 = vpop.f32.mrf.mxu0 }
  0xf6   :  { %248 = vmatmul.msk.f32.vlgmr.msra.gmra.mxu2 %vm55_vm0, %v79_v29 }
  0xfd   :  { %v82_v30 = vpop.f32.mrf.mxu1 }
  0xfe   :  { %249 = vmatmul.msk.f32.gmra.mxu2 %vm55_vm0, %v82_v30 }
 0x105   :  { %v108_v31 = vpop.f32.mrf.mxu1 }
 0x106   :  { %252 = vmatmul.msk.f32.vlgmr.msrb.gmra.mxu0 %vm55_vm0, %v108_v31 }
 0x10d   :  { %v111_v32 = vpop.f32.mrf.mxu1 }
 0x10e   :  { %253 = vmatmul.msk.f32.gmra.mxu0 %vm55_vm0, %v111_v32 }
 0x179   :  { %v145_v33 = vpop.f32.mrf.mxu2 }
 0x17a   :  { %v176_v35 = vadd.f32 %v175_v34, %v145_v33 }
 0x181   :  { %v148_v40 = vpop.f32.mrf.mxu2 }
 0x182   :  { %v179_v42 = vadd.f32 %v178_v41, %v148_v40 }
 0x183   :  { %v204_v37 = vpop.f32.mrf.mxu0 }
 0x184   :  { %v210_v38 = vadd.f32 %v204_v37, %v176_v35 }
 0x186   :  { %v216_v39 = vadd.f32 %v265_v36, %v210_v38 }
 0x188   :  { %218 = vst.msk [vmem:[#allocation2] sm:$0xff] %vm151_vm5, %v216_v39 }
 0x18b   :  { %v207_v43 = vpop.f32.mrf.mxu0 }
 0x18c   :  { %v211_v44 = vadd.f32 %v207_v43, %v179_v42 }
 0x18e   :  { %v217_v45 = vadd.f32 %v265_v36, %v211_v44 }
 0x190   :  { %219 = vst.msk [vmem:[#allocation2 + $0x8] sm:$0xff] %vm151_vm5, %v217_v45 }
 0x191   :  { %232 = dma.vmem_to_hbm [thread:$0]  %s225_s20, 256, %s227_s23, [#allocation3], %s296_s4, %s296_s4, %s297_s24  }
 0x192   :  { %290 = dma.done.wait [#allocation3], 256  }
 0x193   :  { %291 = vsyncadd [#allocation3], 4294967040 }
 0x194   :  { %237 = vsyncpa [#allocation3], 1 }

</bundles_post_ra>
